<compile_context>
chip_gen: v7x
topology: tpu7x:2x2x1
jax: 0.10.0
libtpu: 0.0.40
codegen_flags: <defaults>
</compile_context>

<pallas_src>
import jax
import jax.numpy as jnp
from jax.experimental import pallas as pl
from jax.experimental.pallas import tpu as pltpu

_LANES = 128
_EXP_CLAMP = 20.0  # for x >= 20, tanh(softplus(x)) == 1.0 to f32 precision


def _mish_math_f32(x32):
    # Single-exp Mish identity: tanh(softplus(x)) = e*(e+2) / (e*(e+2) + 2).
    # Clamp the exp argument so e*(e+2) never overflows to inf (inf/inf -> NaN);
    # the clamp is exact for f32 since tanh(softplus(20)) == 1.0.
    e = jnp.exp(jnp.minimum(x32, _EXP_CLAMP))
    num = e * (e + 2.0)
    return x32 * (num / (num + 2.0))


def _mish_kernel(x_ref, o_ref):
    x = x_ref[...].astype(jnp.float32)
    o_ref[...] = _mish_math_f32(x).astype(o_ref.dtype)


def _mish_2d(x2d: jax.Array, *, target_block_bytes: int) -> jax.Array:
    """Run the Mish kernel over a lane-dense (rows, 128) slab."""
    rows, lanes = x2d.shape
    dtype = x2d.dtype
    itemsize = jnp.dtype(dtype).itemsize
    row_bytes = lanes * itemsize
    # Native sublane tile: 8 for 32-bit, 16 for bf16/f16, 32 for 8-bit dtypes.
    sub = max(8, 32 // itemsize)

    # Target ~target_block_bytes per block (4 MiB default).
    block_rows = max(sub, int(target_block_bytes) // row_bytes)
    # For non-tiny inputs, force >= 2 grid blocks so the "parallel" grid axis
    # can be sharded across the two v7x TensorCores (no-op on v5e/v6e).
    if rows * row_bytes >= (512 << 10):
        block_rows = min(block_rows, pl.cdiv(rows, 2))
    block_rows = min(block_rows, rows)
    block_rows = pl.cdiv(block_rows, sub) * sub  # sublane-aligned (may exceed rows; Pallas masks)
    grid = (pl.cdiv(rows, block_rows),)

    # Double-buffered in + out footprint, plus margin; always >= 32 MiB so v5e's
    # 16 MiB default scoped-VMEM limit never bites, capped below v7x physical.
    block_bytes = block_rows * row_bytes
    vmem_limit = int(min(56 << 20, max(32 << 20, 4 * block_bytes + (8 << 20))))

    total = rows * lanes
    cost = pl.CostEstimate(
        flops=6 * total,
        transcendentals=total,
        bytes_accessed=2 * total * itemsize,
    )

    return pl.pallas_call(
        _mish_kernel,
        out_shape=jax.ShapeDtypeStruct((rows, lanes), dtype),
        grid_spec=pltpu.PrefetchScalarGridSpec(
            num_scalar_prefetch=0,
            grid=grid,
            in_specs=[pl.BlockSpec((block_rows, lanes), lambda i: (i, 0))],
            out_specs=pl.BlockSpec((block_rows, lanes), lambda i: (i, 0)),
        ),
        compiler_params=pltpu.CompilerParams(
            dimension_semantics=("parallel",),  # megacore sharding on v7x
            vmem_limit_bytes=vmem_limit,
        ),
        cost_estimate=cost,
    )(x2d)


def mish(x: jax.Array, *, target_block_bytes: int = 4 << 20) -> jax.Array:
    """Elementwise Mish on TPU. Accepts any shape / float dtype."""
    orig_shape = x.shape
    orig_dtype = x.dtype
    total = x.size
    if total == 0:
        return x

    x_flat = jnp.ravel(x)
    rem = total % _LANES
    aligned = total - rem

    if rem == 0:
        # Common case: zero-copy reshape to (rows, 128).
        out_flat = _mish_2d(
            x_flat.reshape(total // _LANES, _LANES),
            target_block_bytes=target_block_bytes,
        ).reshape(total)
    elif aligned == 0:
        # Tiny input (< 128 elements): pad a single row; negligible traffic.
        pad = jnp.zeros((_LANES - rem,), dtype=orig_dtype)
        out_row = _mish_2d(
            jnp.concatenate([x_flat, pad]).reshape(1, _LANES),
            target_block_bytes=target_block_bytes,
        ).reshape(_LANES)
        out_flat = out_row[:total]
    else:
        # Ragged tail: kernel on the 128-aligned prefix, plain jnp on the
        # <128-element tail (same math), then stitch. Avoids padding/slicing
        # the whole tensor through HBM twice.
        head = _mish_2d(
            x_flat[:aligned].reshape(aligned // _LANES, _LANES),
            target_block_bytes=target_block_bytes,
        ).reshape(aligned)
        tail = _mish_math_f32(x_flat[aligned:].astype(jnp.float32)).astype(orig_dtype)
        out_flat = jnp.concatenate([head, tail])

    return out_flat.reshape(orig_shape)


def _mish_ref(x):
    # pure-JAX reference for correctness check
    return x * jnp.tanh(jax.nn.softplus(x))


if __name__ == "__main__":
    key = jax.random.PRNGKey(0)

    # NCHW input like the PyTorch module would see from a conv stack.
    x = jax.random.normal(key, (2, 4, 16, 16), dtype=jnp.float32) * 3.0
    y = jax.block_until_ready(mish(x))
    y_ref = _mish_ref(x)
    assert y.shape == x.shape and y.dtype == x.dtype
    assert jnp.allclose(y, y_ref, atol=1e-5, rtol=1e-5)

    # Non-lane-aligned tail path (total % 128 != 0): prefix kernel + jnp tail.
    x2 = jax.random.normal(jax.random.PRNGKey(1), (2, 3, 5, 7), dtype=jnp.float32) * 3.0
    y2 = jax.block_until_ready(mish(x2))
    assert y2.shape == x2.shape and y2.dtype == x2.dtype
    assert jnp.allclose(y2, _mish_ref(x2), atol=1e-5, rtol=1e-5)

    # bf16 path exercises the 16-row sublane rounding + dtype-preserving DMA.
    x3 = jax.random.normal(jax.random.PRNGKey(2), (4, 8, 32, 32), dtype=jnp.bfloat16)
    y3 = jax.block_until_ready(mish(x3))
    assert y3.shape == x3.shape and y3.dtype == x3.dtype
    assert jnp.allclose(
        y3.astype(jnp.float32),
        _mish_ref(x3.astype(jnp.float32)),
        atol=2e-2,
        rtol=2e-2,
    )

    print("KERNEL_OK")
</pallas_src>

<mosaic_0001>
module attributes {stable_mosaic.version = 11 : i64} {
  func.func @_mish_kernel(%arg0: i32, %arg1: memref<16x128xf32, #tpu.memory_space<vmem>>, %arg2: memref<16x128xf32, #tpu.memory_space<vmem>>) attributes {dimension_semantics = [#tpu.dimension_semantics<parallel>], iteration_bounds = array<i64: 1>, scalar_prefetch = 0 : i64, scratch_operands = 0 : i64, tpu.core_type = #tpu.core_type<tc>, window_params = [{transform_indices = @transform_0, window_bounds = array<i64: 16, 128>}, {transform_indices = @transform_1, window_bounds = array<i64: 16, 128>}]} {
    %c0 = arith.constant 0 : index
    %c0_0 = arith.constant 0 : index
    %0 = vector.load %arg1[%c0, %c0_0] : memref<16x128xf32, #tpu.memory_space<vmem>>, vector<16x128xf32>
    %cst = arith.constant 2.000000e+01 : f32
    %1 = vector.broadcast %cst : f32 to vector<16x128xf32>
    %2 = arith.minimumf %0, %1 : vector<16x128xf32>
    %3 = math.exp %2 : vector<16x128xf32>
    %cst_1 = arith.constant 2.000000e+00 : f32
    %4 = vector.broadcast %cst_1 : f32 to vector<16x128xf32>
    %5 = arith.addf %3, %4 : vector<16x128xf32>
    %6 = arith.mulf %3, %5 : vector<16x128xf32>
    %cst_2 = arith.constant 2.000000e+00 : f32
    %7 = vector.broadcast %cst_2 : f32 to vector<16x128xf32>
    %8 = arith.addf %6, %7 : vector<16x128xf32>
    %9 = arith.divf %6, %8 : vector<16x128xf32>
    %10 = arith.mulf %0, %9 : vector<16x128xf32>
    %c0_3 = arith.constant 0 : index
    %c0_4 = arith.constant 0 : index
    %11 = vector.load %arg2[%c0_3, %c0_4] : memref<16x128xf32, #tpu.memory_space<vmem>>, vector<16x128xf32>
    tpu.vector_store %arg2[%c0_3, %c0_4], %10 {strides = array<i32>} : memref<16x128xf32, #tpu.memory_space<vmem>>, vector<16x128xf32>,
    return
  }
  func.func @transform_0(%arg0: i32) -> (i32, i32) {
    %c0_i32 = arith.constant 0 : i32
    %c0_i32_0 = arith.constant 0 : i32
    return %arg0, %c0_i32 : i32, i32
  }
  func.func @transform_1(%arg0: i32) -> (i32, i32) {
    %c0_i32 = arith.constant 0 : i32
    %c0_i32_0 = arith.constant 0 : i32
    return %arg0, %c0_i32 : i32, i32
  }
}

</mosaic_0001>

<bundles_post_ra>
// kernel: tpu_custom_call.1
= control target key start
LH: loop header
LB: loop body
LE: loop exit
PB: predicated region body
PF: predicated region fallthrough
CT: control target
= control target key end

     0   :  { %6 = vsyncpa [#allocation3], 0  ;;  %s166_s0 = inlined_call_operand.hbm [shape: f32[16,128], index: 0, kind: input, shape index: {}]   ;;  %s167_s1 = inlined_call_operand.hbm [shape: f32[16,128], index: 1, kind: output, shape index: {}]  }
   0x1   :  { %7 = vsyncpa [#allocation4], 0  ;;  %s122_s6 = smov [#allocation2]   ;;  %s74_s10 = scalar_lea.hbm %s166_s0, 256 }
   0x2   :  { %s13_s7 = sshll.u32 %s122_s6, 4  ;;  %p75_p0 = scmp.ne.s32.totalorder %s166_s0, %s74_s10  ;;  %s14_s7 = int_to_ptr.vmem [resolvable:$true] %s13_s7 }
   0x3   :  { %p78_p1 = scmp.lt.u32.totalorder %s74_s10, %s166_s0 }
   0x5   :  { %p80_p2 = pnand %p78_p1, %p75_p0 }
   0x7   :  { %83 = shalt.err (!%p80_p2)
}
   0x8   :  { %s84_s15 = scalar_lea.vmem %s14_s7, 256  ;;  %p89_p4 = scmp.lt.s32.totalorder %s14_s7, %s14_s7 }
   0x9   :  { %p85_p3 = scmp.ne.s32.totalorder %s14_s7, %s84_s15  ;;  %p90_p5 = scmp.lt.s32.totalorder %s84_s15, %s84_s15 }
   0xb   :  { %p91_p6 = por %p90_p5, %p89_p4 }
   0xd   :  { %p92_p7 = pnand %p91_p6, %p85_p3 }
   0xf   :  { %95 = shalt.err (!%p92_p7)
}
  0x10   :  { %s123_s16 = smov 128   ;;  %s124_s17 = smov 8  }
  0x11   :  { %19 = dma.hbm_to_vmem [thread:$0]  %s166_s0, 256, %s14_s7, [#allocation3], %s123_s16, %s123_s16, %s124_s17  }
  0x12   :  { %118 = dma.done.wait [#allocation3], 256  }
  0x13   :  { %119 = vsyncadd [#allocation3], 4294967040  ;;  %v23_v0 = vld [vmem:[#allocation2] sm:$0xff]  ;;  %v24_v1 = vld [vmem:[#allocation2 + $0x8] sm:$0xff]  ;;  %s125_s0 = smov [#allocation5]  }
  0x14   :  { %v25_v2 = vmin.f32 %v23_v0, 20.0  ;;  %v26_v3 = vmin.f32 %v24_v1, 20.0  ;;  %s50_s20 = sshll.u32 %s125_s0, 4  ;;  %s51_s20 = int_to_ptr.vmem [resolvable:$true] %s50_s20 }
  0x15   :  { %s96_s21 = scalar_lea.vmem %s51_s20, 256  ;;  %p101_p9 = scmp.lt.s32.totalorder %s51_s20, %s51_s20 }
  0x16   :  { %v27_v4 = vmul.f32 1.442695, %v25_v2  ;;  %v29_v5 = vmul.f32 1.442695, %v26_v3  ;;  %p97_p8 = scmp.ne.s32.totalorder %s51_s20, %s96_s21  ;;  %p102_p10 = scmp.lt.s32.totalorder %s96_s21, %s96_s21 }
  0x18   :  { %66 = vpow2.f32 %v27_v4  ;;  %p103_p11 = por %p102_p10, %p101_p9 }
  0x19   :  { %68 = vpow2.f32 %v29_v5 }
  0x1a   :  { %p104_p12 = pnand %p103_p11, %p97_p8 }
  0x22   :  { %v67_v6 = vpop.eup %66 }
  0x23   :  { %v69_v7 = vpop.eup %68  ;;  %v31_v8 = vadd.f32 2.0, %v67_v6 }
  0x24   :  { %v32_v9 = vadd.f32 2.0, %v69_v7 }
  0x25   :  { %v33_v10 = vmul.f32 %v67_v6, %v31_v8 }
  0x26   :  { %v34_v11 = vmul.f32 %v69_v7, %v32_v9 }
  0x27   :  { %v35_v12 = vadd.f32 2.0, %v33_v10 }
  0x28   :  { %v36_v13 = vadd.f32 2.0, %v34_v11 }
  0x29   :  { %70 = vrcp.f32 %v35_v12 }
  0x2a   :  { %72 = vrcp.f32 %v36_v13 }
  0x33   :  { %v71_v14 = vpop.eup %70 }
  0x34   :  { %v73_v15 = vpop.eup %72  ;;  %v38_v16 = vmul.f32 %v71_v14, %v33_v10 }
  0x35   :  { %v40_v17 = vmul.f32 %v73_v15, %v34_v11 }
  0x36   :  { %v41_v18 = vmul.f32 %v38_v16, %v23_v0 }
  0x37   :  { %v42_v19 = vmul.f32 %v40_v17, %v24_v1 }
  0x38   :  { %43 = vst [vmem:[#allocation5] sm:$0xff] %v41_v18 }
  0x39   :  { %44 = vst [vmem:[#allocation5 + $0x8] sm:$0xff] %v42_v19 }
  0x3a   :  { %107 = shalt.err (!%p104_p12)
}
  0x3b   :  { %s108_s24 = scalar_lea.hbm %s167_s1, 256 }
  0x3c   :  { %p109_p13 = scmp.ne.s32.totalorder %s167_s1, %s108_s24  ;;  %p112_p0 = scmp.lt.u32.totalorder %s108_s24, %s167_s1 }
  0x3e   :  { %p114_p1 = pnand %p112_p0, %p109_p13 }
  0x40   :  { %117 = shalt.err (!%p114_p1)
}
  0x41   :  { %56 = dma.vmem_to_hbm [thread:$0]  %s51_s20, 256, %s167_s1, [#allocation4], %s123_s16, %s123_s16, %s124_s17  }
  0x42   :  { %120 = dma.done.wait [#allocation4], 256  }
  0x43   :  { %121 = vsyncadd [#allocation4], 4294967040 }
  0x44   :  { %60 = vsyncpa [#allocation3], 1 }
  0x45   :  { %61 = vsyncpa [#allocation4], 1 }

</bundles_post_ra>
